<compile_context>
chip_gen: v5e
topology: v5e:2x2
jax: 0.10.0
libtpu: 0.0.40
codegen_flags: <defaults>
</compile_context>

<pallas_src>
import functools

import jax
import jax.numpy as jnp
import numpy as np
from jax.experimental import pallas as pl
from jax.experimental.pallas import tpu as pltpu

_INV_SQRT2 = 0.7071067811865476


def _erf(x):
    # Abramowitz & Stegun 7.1.26 polynomial (|err| < 1.5e-7): exp/mul/add/where only.
    sign = jnp.where(x >= 0.0, 1.0, -1.0)
    ax = jnp.abs(x)
    t = 1.0 / (1.0 + 0.3275911 * ax)
    poly = t * (0.254829592 + t * (-0.284496736 + t * (1.421413741
               + t * (-1.453152027 + t * 1.061405429))))
    return sign * (1.0 - poly * jnp.exp(-ax * ax))


def _token_selection_kernel(x_ref, w_ref, b_ref, sw_ref, prelu_ref, o_ref, *,
                            matmul_dtype):
    x = x_ref[0]                      # (T, D)
    w = w_ref[...]                    # (S, D) stacked classifier weights
    if matmul_dtype is not None:      # bf16 MXU operands (v6e/v7x fast path)
        x = x.astype(matmul_dtype)
        w = w.astype(matmul_dtype)
    T = x.shape[0]

    # ---- classifier scores, lane-dense: (S, T), T on the 128-lane axis ----
    scores = jnp.einsum('sd,td->st', w, x, preferred_element_type=jnp.float32)
    scores = scores + b_ref[...]                         # (S, 1) bias, lane broadcast

    # ---- PReLU (slope is an SMEM scalar) ----
    a = prelu_ref[0]
    p = jnp.where(scores >= 0.0, scores, a * scores)

    # ---- celu(p) * silu(p) + gelu(p), all on (S, T) ----
    celu = jnp.maximum(p, 0.0) + jnp.minimum(0.0, jnp.exp(jnp.minimum(p, 0.0)) - 1.0)
    # Full-precision reciprocal here: silu feeds the rank comparison below, and an
    # approx EUP rcp could flip near-tied ranks relative to the f32 reference.
    silu = p * pl.reciprocal(1.0 + jnp.exp(-p), approx=False)
    gelu = 0.5 * p * (1.0 + _erf(p * _INV_SQRT2))
    ts = celu * silu + gelu                              # (S, T)

    # ---- weighted combine over S (selu(token_weights) precomputed in wrapper) ----
    combined = jnp.sum(ts * sw_ref[...], axis=0, keepdims=True)    # (1, T)
    sum_ts = jnp.sum(ts, axis=0, keepdims=True)                     # (1, T)

    # ---- topk(k=T) + scatter_add == permute sum_ts by descending rank ----
    c_row = combined                     # c[p] along lanes
    c_col = combined.reshape(T, 1)       # c[q] along sublanes
    row_idx = jax.lax.broadcasted_iota(jnp.int32, (T, T), 0)   # q (and j) index
    col_idx = jax.lax.broadcasted_iota(jnp.int32, (T, T), 1)   # p index
    # beats[q, p]: token q outranks token p (stable descending order).
    beats = (c_col > c_row) | ((c_col == c_row) & (row_idx < col_idx))

    # rank(p) = sum_q beats[q, p]  ->  (1, T) row via a bf16 MXU matmul (0/1 exact).
    beats_bf = beats.astype(jnp.float32).astype(jnp.bfloat16)
    ones_row = jnp.ones((1, T), dtype=jnp.bfloat16)
    rank = jnp.dot(ones_row, beats_bf, preferred_element_type=jnp.float32)
    rank_i = rank.astype(jnp.int32)                              # exact small ints

    # gathered[p] = sum_ts[rank(p)]  ->  sum_ts_row @ perm with perm[j,p]=[rank(p)==j].
    # perm stays f32 so the MXU value gather is exact.
    perm = (row_idx == rank_i).astype(jnp.float32)               # (T, T)
    gathered = jnp.dot(sum_ts, perm, preferred_element_type=jnp.float32)   # (1, T)
    importance = 1.0 + gathered

    # ---- softmax over tokens (single lane-axis reduce), then 1 + probs ----
    m = jnp.max(importance, axis=1, keepdims=True)
    e = jnp.exp(importance - m)
    denom = jnp.sum(e, axis=1, keepdims=True)
    probs = e * pl.reciprocal(denom, approx=True)                # EUP, off the VALU
    o_ref[0] = (1.0 + probs).astype(o_ref.dtype)                 # lane-dense (1, T) store


def token_selection(x, w, b, prelu_w, token_w, *, matmul_dtype=None):
    """x: (B, T, D); w: (S, D) stacked Linear weights; b: (S,); prelu_w: (1,);
    token_w: (S, 1).  Returns (B, T, 1), matching the PyTorch module."""
    B, T, D = x.shape
    S = w.shape[0]
    b_col = b.reshape(S, 1).astype(jnp.float32)
    # selu(token_weights) is grid-invariant: hoist it out of the kernel.
    sw = jax.nn.selu(token_w.astype(jnp.float32)).reshape(S, 1)
    prelu_a = prelu_w.reshape(-1)[:1].astype(jnp.float32)        # (1,) SMEM scalar

    # Explicit VMEM budget (re-derived for v7x's 64 MiB physical VMEM): the live
    # set is the double-buffered x block + a few (T, T) mask intermediates +
    # (S, T) activation temporaries + resident params.
    est = (2 * T * D * x.dtype.itemsize      # x block, double-buffered
           + 6 * T * T * 4                   # beats / perm / iota intermediates
           + 16 * S * T * 4                  # (S, T) activation temporaries
           + S * D * 4 + 8 * T * 4)
    vmem_limit = int(min(max(2 * est, 32 * 2 ** 20), 60 * 2 ** 20))

    kernel = functools.partial(_token_selection_kernel, matmul_dtype=matmul_dtype)
    out = pl.pallas_call(
        kernel,
        out_shape=jax.ShapeDtypeStruct((B, 1, T), x.dtype),
        grid_spec=pltpu.PrefetchScalarGridSpec(
            num_scalar_prefetch=0,
            grid=(B,),
            in_specs=[
                pl.BlockSpec((1, T, D), lambda i: (i, 0, 0)),       # x, one batch per step
                pl.BlockSpec((S, D), lambda i: (0, 0)),             # stacked weights (VMEM-resident)
                pl.BlockSpec((S, 1), lambda i: (0, 0)),             # stacked biases
                pl.BlockSpec((S, 1), lambda i: (0, 0)),             # selu(token_weights)
                pl.BlockSpec(memory_space=pltpu.MemorySpace.SMEM),  # PReLU slope scalar
            ],
            out_specs=pl.BlockSpec((1, 1, T), lambda i: (i, 0, 0)),  # lane-dense output rows
        ),
        compiler_params=pltpu.CompilerParams(
            dimension_semantics=("parallel",),      # batch axis: megacore / v7x 2-TC sharding
            vmem_limit_bytes=vmem_limit,
        ),
    )(x, w, b_col, sw, prelu_a)
    return out.reshape(B, T, 1)        # (B,1,T) and (B,T,1) share the same linear order


def reference(x, w, b, prelu_w, token_w):
    """Pure-JAX mirror of the PyTorch forward, for correctness checking."""
    B, T, D = x.shape
    S = w.shape[0]
    scores = jnp.einsum('btd,sd->sbt', x, w) + b.reshape(S, 1, 1)
    a = prelu_w.reshape(-1)[0]
    p = jnp.where(scores >= 0.0, scores, a * scores)
    celu = jnp.maximum(p, 0.0) + jnp.minimum(0.0, jnp.expm1(jnp.minimum(p, 0.0)))
    silu = p * jax.nn.sigmoid(p)
    gelu = jax.nn.gelu(p, approximate=False)
    ts = celu * silu + gelu                                  # (S, B, T)
    sw = jax.nn.selu(token_w.reshape(S))
    combined = jnp.einsum('s,sbt->bt', sw, ts)               # (B, T)
    sum_ts = jnp.sum(ts, axis=0)                             # (B, T)
    idx = jnp.argsort(-combined, axis=-1)                    # topk(k=T) indices
    importance = jnp.ones_like(combined).at[jnp.arange(B)[:, None], idx].add(sum_ts)
    probs = jax.nn.softmax(importance, axis=-1)
    return (1.0 + probs)[..., None]


if __name__ == "__main__":
    B, T, D, S = 2, 8, 32, 3          # batch, tokens, model_dim, num_selections
    key = jax.random.PRNGKey(0)
    kx, kw, kb, ktw = jax.random.split(key, 4)

    x = jax.random.normal(kx, (B, T, D), jnp.float32)
    bound = 1.0 / np.sqrt(D)
    w = jax.random.uniform(kw, (S, D), jnp.float32, -bound, bound)   # stacked Linear weights
    b = jax.random.uniform(kb, (S,), jnp.float32, -bound, bound)     # stacked Linear biases
    prelu_w = jnp.full((1,), 0.25, jnp.float32)                      # PReLU default init
    token_w = jax.random.normal(ktw, (S, 1), jnp.float32)            # kaiming_normal_, fan_in=1

    out = jax.block_until_ready(token_selection(x, w, b, prelu_w, token_w))
    ref = reference(x, w, b, prelu_w, token_w)
    np.testing.assert_allclose(np.asarray(out), np.asarray(ref), atol=2e-3, rtol=2e-3)

    # bf16 MXU-operand fast path (v6e/v7x): exercise compile + run; only sanity
    # bounds are asserted because bf16 rounding can legitimately reorder
    # near-tied ranks relative to the f32 reference.
    out_bf = jax.block_until_ready(
        token_selection(x, w, b, prelu_w, token_w, matmul_dtype=jnp.bfloat16))
    ob = np.asarray(out_bf)
    assert np.isfinite(ob).all() and (ob >= 1.0).all() and (ob <= 2.0).all()

    print("KERNEL_OK")
</pallas_src>

<mosaic_0001>
module attributes {stable_mosaic.version = 11 : i64} {
  func.func @_token_selection_kernel(%arg0: i32, %arg1: memref<1x8x32xf32, #tpu.memory_space<vmem>>, %arg2: memref<3x32xf32, #tpu.memory_space<vmem>>, %arg3: memref<3x1xf32, #tpu.memory_space<vmem>>, %arg4: memref<3x1xf32, #tpu.memory_space<vmem>>, %arg5: memref<1xf32, #tpu.memory_space<smem>>, %arg6: memref<1x1x8xf32, #tpu.memory_space<vmem>>) attributes {dimension_semantics = [#tpu.dimension_semantics<parallel>], iteration_bounds = array<i64: 2>, scalar_prefetch = 0 : i64, scratch_operands = 0 : i64, tpu.core_type = #tpu.core_type<tc>, window_params = [{transform_indices = @transform_0, window_bounds = array<i64: 1, 8, 32>}, {pipeline_mode = #tpu.pipeline_mode<synchronous>, transform_indices = @transform_1, window_bounds = array<i64: 3, 32>}, {pipeline_mode = #tpu.pipeline_mode<synchronous>, transform_indices = @transform_2, window_bounds = array<i64: 3, 1>}, {pipeline_mode = #tpu.pipeline_mode<synchronous>, transform_indices = @transform_3, window_bounds = array<i64: 3, 1>}, {transform_indices = @transform_4, window_bounds = array<i64: 1>}, {transform_indices = @transform_5, window_bounds = array<i64: 1, 1, 8>}]} {
    %c0 = arith.constant 0 : index
    %c0_0 = arith.constant 0 : index
    %c0_1 = arith.constant 0 : index
    %0 = vector.load %arg1[%c0, %c0_0, %c0_1] : memref<1x8x32xf32, #tpu.memory_space<vmem>>, vector<1x8x32xf32>
    %1 = vector.shape_cast %0 : vector<1x8x32xf32> to vector<8x32xf32>
    %c0_2 = arith.constant 0 : index
    %c0_3 = arith.constant 0 : index
    %2 = vector.load %arg2[%c0_2, %c0_3] : memref<3x32xf32, #tpu.memory_space<vmem>>, vector<3x32xf32>
    "tpu.trace_start"() <{level = 10 : i32, message = "sd,td->st"}> : () -> ()
    %cst = arith.constant dense<0.000000e+00> : vector<3x8xf32>
    %3 = tpu.matmul %2, %1, %cst {dimension_numbers = #tpu.dot_dimension_numbers<[1], [1], [0], [0], [0, 0, 1, 0], [], []>} : vector<3x32xf32>, vector<8x32xf32>, vector<3x8xf32> -> vector<3x8xf32>
    "tpu.trace_stop"() : () -> ()
    %c0_4 = arith.constant 0 : index
    %c0_5 = arith.constant 0 : index
    %4 = vector.load %arg3[%c0_4, %c0_5] : memref<3x1xf32, #tpu.memory_space<vmem>>, vector<3x1xf32>
    %5 = vector.broadcast %4 : vector<3x1xf32> to vector<3x8xf32>
    %6 = arith.addf %3, %5 : vector<3x8xf32>
    %c0_6 = arith.constant 0 : index
    %7 = memref.load %arg5[%c0_6] : memref<1xf32, #tpu.memory_space<smem>>
    %cst_7 = arith.constant 0.000000e+00 : f32
    %8 = vector.broadcast %cst_7 : f32 to vector<3x8xf32>
    %9 = arith.cmpf oge, %6, %8 : vector<3x8xf32>
    %10 = vector.broadcast %7 : f32 to vector<3x8xf32>
    %11 = arith.mulf %10, %6 : vector<3x8xf32>
    %12 = arith.select %9, %6, %11 : vector<3x8xi1>, vector<3x8xf32>
    %cst_8 = arith.constant 0.000000e+00 : f32
    %13 = vector.broadcast %cst_8 : f32 to vector<3x8xf32>
    %14 = arith.maximumf %12, %13 : vector<3x8xf32>
    %cst_9 = arith.constant 0.000000e+00 : f32
    %15 = vector.broadcast %cst_9 : f32 to vector<3x8xf32>
    %16 = arith.minimumf %12, %15 : vector<3x8xf32>
    %17 = math.exp %16 : vector<3x8xf32>
    %cst_10 = arith.constant 1.000000e+00 : f32
    %18 = vector.broadcast %cst_10 : f32 to vector<3x8xf32>
    %19 = arith.subf %17, %18 : vector<3x8xf32>
    %cst_11 = arith.constant 0.000000e+00 : f32
    %20 = vector.broadcast %cst_11 : f32 to vector<3x8xf32>
    %21 = arith.minimumf %20, %19 : vector<3x8xf32>
    %22 = arith.addf %14, %21 : vector<3x8xf32>
    %cst_12 = arith.constant 0.000000e+00 : f32
    %23 = vector.broadcast %cst_12 : f32 to vector<3x8xf32>
    %24 = arith.subf %23, %12 : vector<3x8xf32>
    %25 = math.exp %24 : vector<3x8xf32>
    %cst_13 = arith.constant 1.000000e+00 : f32
    %26 = vector.broadcast %cst_13 : f32 to vector<3x8xf32>
    %27 = arith.addf %26, %25 : vector<3x8xf32>
    %28 = tpu.reciprocal %27 : vector<3x8xf32> -> vector<3x8xf32>
    %29 = arith.mulf %12, %28 : vector<3x8xf32>
    %cst_14 = arith.constant 5.000000e-01 : f32
    %30 = vector.broadcast %cst_14 : f32 to vector<3x8xf32>
    %31 = arith.mulf %30, %12 : vector<3x8xf32>
    %cst_15 = arith.constant 0.707106769 : f32
    %32 = vector.broadcast %cst_15 : f32 to vector<3x8xf32>
    %33 = arith.mulf %12, %32 : vector<3x8xf32>
    %cst_16 = arith.constant 0.000000e+00 : f32
    %34 = vector.broadcast %cst_16 : f32 to vector<3x8xf32>
    %35 = arith.cmpf oge, %33, %34 : vector<3x8xf32>
    %cst_17 = arith.constant 1.000000e+00 : f32
    %cst_18 = arith.constant -1.000000e+00 : f32
    %36 = vector.broadcast %cst_17 : f32 to vector<3x8xf32>
    %37 = vector.broadcast %cst_18 : f32 to vector<3x8xf32>
    %38 = arith.select %35, %36, %37 : vector<3x8xi1>, vector<3x8xf32>
    %39 = math.absf %33 : vector<3x8xf32>
    %cst_19 = arith.constant 0.327591091 : f32
    %40 = vector.broadcast %cst_19 : f32 to vector<3x8xf32>
    %41 = arith.mulf %40, %39 : vector<3x8xf32>
    %cst_20 = arith.constant 1.000000e+00 : f32
    %42 = vector.broadcast %cst_20 : f32 to vector<3x8xf32>
    %43 = arith.addf %42, %41 : vector<3x8xf32>
    %cst_21 = arith.constant 1.000000e+00 : f32
    %44 = vector.broadcast %cst_21 : f32 to vector<3x8xf32>
    %45 = arith.divf %44, %43 : vector<3x8xf32>
    %cst_22 = arith.constant 1.06140542 : f32
    %46 = vector.broadcast %cst_22 : f32 to vector<3x8xf32>
    %47 = arith.mulf %45, %46 : vector<3x8xf32>
    %cst_23 = arith.constant -1.45315206 : f32
    %48 = vector.broadcast %cst_23 : f32 to vector<3x8xf32>
    %49 = arith.addf %48, %47 : vector<3x8xf32>
    %50 = arith.mulf %45, %49 : vector<3x8xf32>
    %cst_24 = arith.constant 1.42141378 : f32
    %51 = vector.broadcast %cst_24 : f32 to vector<3x8xf32>
    %52 = arith.addf %51, %50 : vector<3x8xf32>
    %53 = arith.mulf %45, %52 : vector<3x8xf32>
    %cst_25 = arith.constant -0.284496725 : f32
    %54 = vector.broadcast %cst_25 : f32 to vector<3x8xf32>
    %55 = arith.addf %54, %53 : vector<3x8xf32>
    %56 = arith.mulf %45, %55 : vector<3x8xf32>
    %cst_26 = arith.constant 0.254829586 : f32
    %57 = vector.broadcast %cst_26 : f32 to vector<3x8xf32>
    %58 = arith.addf %57, %56 : vector<3x8xf32>
    %59 = arith.mulf %45, %58 : vector<3x8xf32>
    %cst_27 = arith.constant 0.000000e+00 : f32
    %60 = vector.broadcast %cst_27 : f32 to vector<3x8xf32>
    %61 = arith.subf %60, %39 : vector<3x8xf32>
    %62 = arith.mulf %61, %39 : vector<3x8xf32>
    %63 = math.exp %62 : vector<3x8xf32>
    %64 = arith.mulf %59, %63 : vector<3x8xf32>
    %cst_28 = arith.constant 1.000000e+00 : f32
    %65 = vector.broadcast %cst_28 : f32 to vector<3x8xf32>
    %66 = arith.subf %65, %64 : vector<3x8xf32>
    %67 = arith.mulf %38, %66 : vector<3x8xf32>
    %cst_29 = arith.constant 1.000000e+00 : f32
    %68 = vector.broadcast %cst_29 : f32 to vector<3x8xf32>
    %69 = arith.addf %68, %67 : vector<3x8xf32>
    %70 = arith.mulf %31, %69 : vector<3x8xf32>
    %71 = arith.mulf %22, %29 : vector<3x8xf32>
    %72 = arith.addf %71, %70 : vector<3x8xf32>
    %c0_30 = arith.constant 0 : index
    %c0_31 = arith.constant 0 : index
    %73 = vector.load %arg4[%c0_30, %c0_31] : memref<3x1xf32, #tpu.memory_space<vmem>>, vector<3x1xf32>
    %74 = vector.broadcast %73 : vector<3x1xf32> to vector<3x8xf32>
    %75 = arith.mulf %72, %74 : vector<3x8xf32>
    %cst_32 = arith.constant dense<0.000000e+00> : vector<8xf32>
    %76 = vector.multi_reduction <add>, %75, %cst_32 [0] : vector<3x8xf32> to vector<8xf32>
    %77 = vector.shape_cast %76 : vector<8xf32> to vector<1x8xf32>
    %cst_33 = arith.constant dense<0.000000e+00> : vector<8xf32>
    %78 = vector.multi_reduction <add>, %72, %cst_33 [0] : vector<3x8xf32> to vector<8xf32>
    %79 = vector.shape_cast %78 : vector<8xf32> to vector<1x8xf32>
    %80 = vector.shape_cast %77 : vector<1x8xf32> to vector<8x1xf32>
    %81 = tpu.iota {dimensions = array<i32: 0>} : vector<8x8xi32>
    %82 = tpu.iota {dimensions = array<i32: 1>} : vector<8x8xi32>
    %83 = vector.broadcast %80 : vector<8x1xf32> to vector<8x8xf32>
    %84 = vector.broadcast %77 : vector<1x8xf32> to vector<8x8xf32>
    %85 = arith.cmpf ogt, %83, %84 : vector<8x8xf32>
    %86 = vector.broadcast %80 : vector<8x1xf32> to vector<8x8xf32>
    %87 = vector.broadcast %77 : vector<1x8xf32> to vector<8x8xf32>
    %88 = arith.cmpf oeq, %86, %87 : vector<8x8xf32>
    %89 = arith.cmpi slt, %81, %82 : vector<8x8xi32>
    %90 = arith.andi %88, %89 : vector<8x8xi1>
    %91 = arith.ori %85, %90 : vector<8x8xi1>
    %92 = arith.extui %91 : vector<8x8xi1> to vector<8x8xi32>
    %93 = arith.sitofp %92 : vector<8x8xi32> to vector<8x8xf32>
    %94 = arith.truncf %93 : vector<8x8xf32> to vector<8x8xbf16>
    %cst_34 = arith.constant 1.000000e+00 : bf16
    %95 = vector.broadcast %cst_34 : bf16 to vector<1x8xbf16>
    %cst_35 = arith.constant dense<0.000000e+00> : vector<1x8xf32>
    %96 = tpu.matmul %95, %94, %cst_35 {dimension_numbers = #tpu.dot_dimension_numbers<[1], [0], [0], [1], [0, 0, 1, 1], [], []>} : vector<1x8xbf16>, vector<8x8xbf16>, vector<1x8xf32> -> vector<1x8xf32>
    %97 = arith.fptosi %96 : vector<1x8xf32> to vector<1x8xi32>
    %98 = vector.broadcast %97 : vector<1x8xi32> to vector<8x8xi32>
    %99 = arith.cmpi eq, %81, %98 : vector<8x8xi32>
    %100 = arith.extui %99 : vector<8x8xi1> to vector<8x8xi32>
    %101 = arith.sitofp %100 : vector<8x8xi32> to vector<8x8xf32>
    %cst_36 = arith.constant dense<0.000000e+00> : vector<1x8xf32>
    %102 = tpu.matmul %79, %101, %cst_36 {dimension_numbers = #tpu.dot_dimension_numbers<[1], [0], [0], [1], [0, 0, 1, 1], [], []>} : vector<1x8xf32>, vector<8x8xf32>, vector<1x8xf32> -> vector<1x8xf32>
    %cst_37 = arith.constant 1.000000e+00 : f32
    %103 = vector.broadcast %cst_37 : f32 to vector<1x8xf32>
    %104 = arith.addf %103, %102 : vector<1x8xf32>
    %cst_38 = arith.constant dense<0xFF800000> : vector<1xf32>
    %105 = vector.multi_reduction <maximumf>, %104, %cst_38 [1] : vector<1x8xf32> to vector<1xf32>
    %106 = vector.shape_cast %105 : vector<1xf32> to vector<1x1xf32>
    %107 = vector.broadcast %106 : vector<1x1xf32> to vector<1x8xf32>
    %108 = arith.subf %104, %107 : vector<1x8xf32>
    %109 = math.exp %108 : vector<1x8xf32>
    %cst_39 = arith.constant dense<0.000000e+00> : vector<1xf32>
    %110 = vector.multi_reduction <add>, %109, %cst_39 [1] : vector<1x8xf32> to vector<1xf32>
    %111 = vector.shape_cast %110 : vector<1xf32> to vector<1x1xf32>
    %112 = tpu.reciprocal %111 {approx = true} : vector<1x1xf32> -> vector<1x1xf32>
    %113 = vector.broadcast %112 : vector<1x1xf32> to vector<1x8xf32>
    %114 = arith.mulf %109, %113 : vector<1x8xf32>
    %cst_40 = arith.constant 1.000000e+00 : f32
    %115 = vector.broadcast %cst_40 : f32 to vector<1x8xf32>
    %116 = arith.addf %115, %114 : vector<1x8xf32>
    %c0_41 = arith.constant 0 : index
    %c0_42 = arith.constant 0 : index
    %c0_43 = arith.constant 0 : index
    %117 = vector.load %arg6[%c0_41, %c0_42, %c0_43] : memref<1x1x8xf32, #tpu.memory_space<vmem>>, vector<1x1x8xf32>
    %118 = vector.shape_cast %117 : vector<1x1x8xf32> to vector<1x8xf32>
    %119 = vector.shape_cast %116 : vector<1x8xf32> to vector<1x1x8xf32>
    tpu.vector_store %arg6[%c0_41, %c0_42, %c0_43], %119 {strides = array<i32>} : memref<1x1x8xf32, #tpu.memory_space<vmem>>, vector<1x1x8xf32>,
    return
  }
  func.func @transform_0(%arg0: i32) -> (i32, i32, i32) {
    %c0_i32 = arith.constant 0 : i32
    %c0_i32_0 = arith.constant 0 : i32
    %c0_i32_1 = arith.constant 0 : i32
    return %arg0, %c0_i32, %c0_i32_0 : i32, i32, i32
  }
  func.func @transform_1(%arg0: i32) -> (i32, i32) {
    %c0_i32 = arith.constant 0 : i32
    %c0_i32_0 = arith.constant 0 : i32
    %c0_i32_1 = arith.constant 0 : i32
    return %c0_i32, %c0_i32_0 : i32, i32
  }
  func.func @transform_2(%arg0: i32) -> (i32, i32) {
    %c0_i32 = arith.constant 0 : i32
    %c0_i32_0 = arith.constant 0 : i32
    %c0_i32_1 = arith.constant 0 : i32
    return %c0_i32, %c0_i32_0 : i32, i32
  }
  func.func @transform_3(%arg0: i32) -> (i32, i32) {
    %c0_i32 = arith.constant 0 : i32
    %c0_i32_0 = arith.constant 0 : i32
    %c0_i32_1 = arith.constant 0 : i32
    return %c0_i32, %c0_i32_0 : i32, i32
  }
  func.func @transform_4(%arg0: i32) -> i32 {
    %c0_i32 = arith.constant 0 : i32
    %c0_i32_0 = arith.constant 0 : i32
    return %c0_i32 : i32
  }
  func.func @transform_5(%arg0: i32) -> (i32, i32, i32) {
    %c0_i32 = arith.constant 0 : i32
    %c0_i32_0 = arith.constant 0 : i32
    %c0_i32_1 = arith.constant 0 : i32
    return %arg0, %c0_i32, %c0_i32_0 : i32, i32, i32
  }
}

</mosaic_0001>

<bundles_post_ra>
// kernel: tpu_custom_call.1
= control target key start
LH: loop header
LB: loop body
LE: loop exit
PB: predicated region body
PF: predicated region fallthrough
CT: control target
= control target key end

     0   :  { %s922_s0 = inlined_call_operand.hbm [shape: f32[2,8,32], index: 0, kind: input, shape index: {}]   ;;  %s923_s1 = inlined_call_operand.vmem [shape: f32[3,32], index: 1, kind: input, shape index: {}]   ;;  %s924_s2 = inlined_call_operand.vmem [shape: f32[3,1], index: 2, kind: input, shape index: {}]   ;;  %s925_s3 = inlined_call_operand.vmem [shape: f32[3,1], index: 3, kind: input, shape index: {}]   ;;  %s926_s4 = inlined_call_operand.<no memory space> [shape: f32[1], index: 4, kind: input, shape index: {}]   ;;  %s927_s5 = inlined_call_operand.hbm [shape: f32[2,1,8], index: 5, kind: output, shape index: {}]  }
   0x1   :  { %10 = sst [smem:[#allocation2]] %s926_s4 }
   0x2   :  { %11 = vsyncpa [#allocation4], 0 }
   0x3   :  { %13 = vsyncpa [#allocation4 + $0x1], 0 }
   0x4   :  { %14 = vsyncpa [#allocation5], 0 }
   0x5   :  { %16 = vsyncpa [#allocation5 + $0x1], 0  ;;  %s760_s20 = smov 0   ;;  %s762_s21 = smov 0  }
   0x6   :  { %s764_s22 = smov 0   ;;  %s766_s23 = smov 0  }
   0x7 LB: > { %s781_s4 = sadd.s32 4294967295, %s720_s23   ;;  %s534_s24 = sadd.s32 4294967294, %s720_s23   ;;  %s720_s23 = sphi %s766_s23, %s937_s23   ;;  %s716_s22 = sphi %s764_s22, %s936_s22   ;;  %s712_s21 = sphi %s762_s21, %s935_s21   ;;  %s708_s20 = sphi %s760_s20, %s934_s20  }
   0x8   : > { %s785_s25 = sadd.s32 1, %s720_s23   ;;  %s29_s26 = sadd.s32 1, %s716_s22 }
   0x9   : > { %s26_s27 = ssub.s32 %s720_s23, %s785_s25  ;;  %p36_p0 = scmp.ne.s32.totalorder %s716_s22, %s712_s21 }
   0xa   : > { %p27_p1 = scmp.eq.s32.totalorder %s26_s27, 0  ;;  %p37_p2 = scmp.eq.s32.totalorder %s720_s23, 0 }
   0xb   : > { %p42_p3 = scmp.ne.s32.totalorder %s712_s21, %s708_s20  ;;  %p43_p4 = scmp.eq.s32.totalorder %s781_s4, 0 }
   0xc   : > { %s797_s28 = scalar_select %p27_p1, %s716_s22, %s29_s26  }
   0xd   : > { %p799_p5 = por %p37_p2, %p36_p0  ;;  %p803_p6 = por %p43_p4, %p42_p3 }
   0xe   : > { %p150_p7 = scmp.eq.s32.totalorder %s781_s4, 1  ;;  %p156_p8 = scmp.eq.s32.totalorder %s534_s24, 1 }
   0xf   : > { %p568_p10 = scmp.lt.s32.totalorder %s720_s23, 2  ;;  %s188_s8 = sand.u32 1, %s716_s22  }
  0x10   : > { %p810_p11 = por %p150_p7, %p36_p0  ;;  %p814_p12 = por %p156_p8, %p42_p3 }
  0x11   : > { %s538_s9 = sshll.u32 %s720_s23, 3  ;;  %s537_s10 = sshll.u32 %s188_s8, 3 }
  0x12   : > { %s196_s13 = scalar_lea.hbm %s922_s0, %s538_s9  ;;  %s192_s15 = scalar_lea.vmem [#allocation3], %s537_s10 }
  0x13   : > { %s198_s14 = sshll.u32 %s196_s13, 4  ;;  %s200_s16 = sshll.u32 %s192_s15, 4  ;;  %s199_s14 = int_to_ptr.hbm [resolvable:$true] %s198_s14  ;;  %s201_s16 = int_to_ptr.vmem [resolvable:$true] %s200_s16 }
  0x14   : > { %p825_p13 = pnand %p568_p10, %p799_p5  ;;  %p539_p0 = scmp.ge.s32.totalorder %s720_s23, 1 }
  0x15   : > { %p205_p1 = scmp.lt.s32.totalorder %s720_s23, 3  ;;  %s189_s18 = scalar_lea.sflag [#allocation4], %s188_s8 }
  0x16   : > { %s624_s19 = sshra.s32 %s199_s14, 4  ;;  %p628_p3 = pneg %p825_p13  ;;  %s625_s19 = int_to_ptr.hbm [resolvable:$true] %s624_s19 }
  0x17   : > { %s626_s24 = scalar_lea.hbm %s625_s19, 8  ;;  %s631_s29 = scalar_lea.hbm %s922_s0, 16 }
  0x18   : > { %p627_p2 = scmp.ne.s32.totalorder %s625_s19, %s626_s24  ;;  %p632_p5 = scmp.lt.s32.totalorder %s625_s19, %s922_s0 }
  0x19   : > { %p633_p8 = scmp.lt.s32.totalorder %s631_s29, %s626_s24 }
  0x1a   : > { %p629_p4 = pnand %p628_p3, %p627_p2 }
  0x1b   : > { %p634_p10 = por %p633_p8, %p632_p5 }
  0x1c   : > { %p630_p7 = pneg %p629_p4 }
  0x1e   : > { %p635_p9 = pnand %p634_p10, %p630_p7 }
  0x20   : > { %638 = shalt.err (!%p635_p9)
}
  0x21   : > { %563 = dma.hbm_to_vmem [thread:$0]  (!%p825_p13), %s199_s14, 128, %s201_s16, %s189_s18  }
  0x22   : > { %p206_p2 = pnand %p539_p0, %p205_p1 }
  0x23   : > { %s846_s8 = sand.u32 (!%p206_p2), 1, %s712_s21  }
  0x24   : > { %209 = sbr.rel (%p206_p2) target bundleno = 900 (0x384), region = 40  ;;  %s540_s11 = sshll.u32 (!%p206_p2), %s846_s8, 3 }
  0x25   : > { %s212_s12 = scalar_lea.sflag (!%p206_p2), [#allocation4], %s846_s8  ;;  %s215_s13 = scalar_lea.vmem (!%p206_p2), [#allocation3], %s540_s11 }
  0x29   : > { %699 = dma.done.wait (%p803_p6), %s212_s12, 128  }
  0x2a   : > { %701 = vsyncadd (%p803_p6), %s212_s12, 4294967168  ;;  %v722_v0 = vmov 0   ;;  %vm252_vm0 = vcmask 261120   ;;  %v244_v1 = vld [vmem:[%s215_s13] sm:$0xff]  ;;  %s279_s30 = sld [smem:[#allocation2]]  ;;  %v374_v11 = vlaneseq  ;;  %v723_v61 = vmov -1.0   ;;  %s464_s27 = scalar_lea.hbm %s927_s5, %s781_s4 }
  0x2b   : > { %607 = vset.pattern.permute.xlu0 %v722_v0  ;;  %v246_v2 = vld [vmem:[%s924_s2] sm:$0x7]  ;;  %541 = vmatpush.xpose.msk.msra.mxu0 %vm252_vm0, %v244_v1  ;;  %vm359_vm11 = vcmask 59392   ;;  %s241_s29 = scalar_lea.vmem [#allocation6], %s846_s8  ;;  %s468_s10 = sshll.u32 %s464_s27, 4  ;;  %s469_s10 = int_to_ptr.hbm [resolvable:$true] %s468_s10 }
  0x2c   : > { %v245_v3 = vld [vmem:[%s923_s1] sm:$0x7]  ;;  %249 = vperm.xlu0 %607, %v246_v2   ;;  %v870_v14 = vshrl.u32 %v374_v11, 7  ;;  %s466_s9 = sshll.u32 %s241_s29, 4  ;;  %s456_s11 = scalar_lea.sflag [#allocation5], %s846_s8  ;;  %s467_s9 = int_to_ptr.vmem [resolvable:$true] %s466_s9 }
  0x2d   : > { %v352_v4 = vld [vmem:[%s925_s3] sm:$0x7]  ;;  %s668_s12 = sshra.s32 %s469_s10, 4  ;;  %s674_s15 = scalar_lea.hbm %s927_s5, 2  ;;  %s669_s12 = int_to_ptr.hbm [resolvable:$true] %s668_s12 }
  0x2e   : > { %542 = vmatmul.msk.f32.vlgmr.msra.gmra.mxu0 %vm252_vm0, %v245_v3  ;;  %608 = vset.pattern.permute.xlu1 %v870_v14  ;;  %s670_s13 = scalar_lea.hbm %s669_s12, 1  ;;  %p675_p0 = scmp.lt.s32.totalorder %s669_s12, %s927_s5 }
  0x2f   : > { %p671_p6 = scmp.ne.s32.totalorder %s669_s12, %s670_s13  ;;  %p676_p1 = scmp.lt.s32.totalorder %s674_s15, %s670_s13 }
  0x30   : > { %v281_v7 = vstv %s279_s30 }
  0x31   : > { %p672_p9 = pnand %p671_p6, %p810_p11  ;;  %p677_p3 = por %p676_p1, %p675_p0 }
  0x33   : > { %p673_p13 = pneg %p672_p9 }
  0x34   : > { %355 = vperm.xlu0 %607, %v352_v4  }
  0x35   : > { %p678_p4 = pnand %p677_p3, %p673_p13 }
  0x3c   : > { %609 = vset.pattern.permute.xlu0 %v870_v14 }
  0x9e   : > { %v250_v5 = vpop.permute.xlu0 %249 }
  0xab   : > { %v276_v6 = vpop.f32.mrf.mxu0 }
  0xac   : > { %v277_v8 = vadd.f32 %v276_v6, %v250_v5 }
  0xae   : > { %vm280_vm1 = vcmp.ge.f32.partialorder %v277_v8, 0.0  ;;  %v282_v9 = vmul.f32 %v281_v7, %v277_v8 }
  0xb0   : > { %v863_v10 = vsel %vm280_vm1, %v277_v8, %v282_v9  ;;  %v356_v8 = vpop.permute.xlu0 %355  ;;  %vm396_vm1 = vcmask 1043456  }
  0xb1   : > { %v291_v12 = vsub.f32 0.0, %v863_v10  ;;  %v867_v13 = vmul.f32 0.70710677, %v863_v10  ;;  %v285_v31 = vmin.f32 %v863_v10, 0.0  ;;  %v284_v63 = vmax.f32 %v863_v10, 0.0 }
  0xb2   : > { %v310_v3 = vmul.f32 0.5, %v863_v10 }
  0xb3   : > { %v292_v15 = vmul.f32 1.442695, %v291_v12  ;;  %v314_v16 = vand.u32 2147483647, %v867_v13  ;;  %v286_v37 = vmul.f32 1.442695, %v285_v31 }
  0xb4   : > { %vm312_vm10 = vcmp.ge.f32.partialorder %v867_v13, 0.0 }
  0xb5   : > { %610 = vpow2.f32 %v292_v15  ;;  %v315_v17 = vmul.f32 0.3275911, %v314_v16  ;;  %v341_v32 = vsub.f32 0.0, %v314_v16  ;;  %v313_v62 = vsel %vm312_vm10, 1.0, %v723_v61 }
  0xb7   : > { %v316_v18 = vadd.f32 1.0, %v315_v17  ;;  %v342_v38 = vmul.f32 %v341_v32, %v314_v16 }
  0xb9   : > { %612 = vrcp.f32 %v316_v18  ;;  %v328_v24 = vand.u32 2147483648, %v316_v18  ;;  %v326_v26 = vand.u32 2147483647, %v316_v18  ;;  %vm322_vm3 = vweird.f32 %v316_v18 }
  0xba   : > { %v343_v42 = vmul.f32 1.442695, %v342_v38 }
  0xbb   : > { %v611_v19 = vpop.eup %610  ;;  %v329_v29 = vor.u32 1.1754944e-38, %v328_v24  ;;  %vm327_vm5 = vcmp.eq.f32.partialorder %v326_v26, 8.507059e+37  ;;  %v725_v26 = vmov 1065369472  }
  0xbc   : > { %v294_v20 = vadd.f32 1.0, %v611_v19 }
  0xbe   : > { %614 = vrcp.f32 %v294_v20  ;;  %v306_v49 = vand.u32 2147483648, %v294_v20  ;;  %vm300_vm7 = vweird.f32 %v294_v20  ;;  %v304_v50 = vand.u32 2147483647, %v294_v20 }
  0xbf   : > { %v613_v21 = vpop.eup %612  ;;  %616 = vpow2.f32 %v286_v37 }
  0xc0   : > { %v318_v22 = vmul.f32 %v613_v21, %v316_v18  ;;  %vm323_vm2 = vweird.f32 %v613_v21  ;;  %618 = vpow2.f32 %v343_v42  ;;  %v307_v56 = vor.u32 1.1754944e-38, %v306_v49 }
  0xc1   : > { %vm324_vm4 = vmor %vm322_vm3, %vm323_vm2  ;;  %vm305_vm9 = vcmp.eq.f32.partialorder %v304_v50, 8.507059e+37  ;;  %vm392_vm2 = vcmask 64512  }
  0xc2   : > { %v319_v23 = vsub.f32 1.0, %v318_v22  ;;  %v724_v22 = vmov 0.0  }
  0xc4   : > { %v320_v25 = vmul.f32 %v613_v21, %v319_v23  ;;  %v615_v28 = vpop.eup %614 }
  0xc5   : > { %v296_v34 = vmul.f32 %v615_v28, %v294_v20  ;;  %vm301_vm6 = vweird.f32 %v615_v28  ;;  %v617_v48 = vpop.eup %616 }
  0xc6   : > { %v321_v27 = vadd.f32 %v613_v21, %v320_v25  ;;  %vm302_vm8 = vmor %vm300_vm7, %vm301_vm6  ;;  %v543_v52 = vadd.f32 -1.0, %v617_v48  ;;  %v619_v55 = vpop.eup %618 }
  0xc7   : > { %v297_v39 = vsub.f32 1.0, %v296_v34 }
  0xc8   : > { %v325_v30 = vsel %vm324_vm4, %v613_v21, %v321_v27  ;;  %v289_v59 = vmin.f32 %v543_v52, 0.0  ;;  %v383_v21 = vand.u32 127, %v374_v11 }
  0xc9   : > { %v330_v33 = vsel %vm327_vm5, %v329_v29, %v325_v30  ;;  %v298_v43 = vmul.f32 %v615_v28, %v297_v39  ;;  %v726_v39 = vmov 1.0   ;;  %vm441_vm5 = vcmask 57344  }
  0xca   : > { %v332_v35 = vmul.f32 1.0614054, %v330_v33  ;;  %v290_v2 = vadd.f32 %v289_v59, %v284_v63  ;;  %vm386_vm12 = vcmp.lt.s32.totalorder %v870_v14, %v383_v21 }
  0xcb   : > { %v299_v46 = vadd.f32 %v615_v28, %v298_v43 }
  0xcc   : > { %v333_v36 = vadd.f32 -1.4531521, %v332_v35 }
  0xcd   : > { %v303_v53 = vsel %vm302_vm8, %v615_v28, %v299_v46 }
  0xce   : > { %v334_v40 = vmul.f32 %v333_v36, %v330_v33  ;;  %v308_v58 = vsel %vm305_vm9, %v307_v56, %v303_v53 }
  0xcf   : > { %v309_v0 = vmul.f32 %v308_v58, %v863_v10 }
  0xd0   : > { %v335_v41 = vadd.f32 1.4214138, %v334_v40 }
  0xd1   : > { %v350_v6 = vmul.f32 %v309_v0, %v290_v2 }
  0xd2   : > { %v336_v44 = vmul.f32 %v335_v41, %v330_v33 }
  0xd4   : > { %v337_v45 = vadd.f32 -0.28449672, %v336_v44 }
  0xd6   : > { %v338_v47 = vmul.f32 %v337_v45, %v330_v33 }
  0xd8   : > { %v339_v51 = vadd.f32 0.2548296, %v338_v47 }
  0xda   : > { %v340_v54 = vmul.f32 %v339_v51, %v330_v33 }
  0xdc   : > { %v345_v57 = vmul.f32 %v619_v55, %v340_v54 }
  0xde   : > { %v346_v60 = vsub.f32 1.0, %v345_v57 }
  0xe0   : > { %v347_v1 = vmul.f32 %v346_v60, %v313_v62 }
  0xe2   : > { %v348_v4 = vadd.f32 1.0, %v347_v1 }
  0xe4   : > { %v349_v5 = vmul.f32 %v348_v4, %v310_v3 }
  0xe6   : > { %v351_v7 = vadd.f32 %v350_v6, %v349_v5 }
  0xe8   : > { %v358_v9 = vmul.f32 %v356_v8, %v351_v7  ;;  %v367_v12 = vsel %vm359_vm11, %v351_v7, 0.0 }
  0xe9   : > { %v368_v27 = vrot.slane %v367_v12, 4 }
  0xea   : > { %v360_v13 = vsel %vm359_vm11, %v358_v9, 0.0 }
  0xeb   : > { %v361_v15 = vrot.slane %v360_v13, 4  ;;  %v369_v28 = vadd.f32 %v368_v27, %v367_v12 }
  0xed   : > { %v362_v16 = vadd.f32 %v361_v15, %v360_v13  ;;  %v370_v11 = vrot.slane %v369_v28, 2 }
  0xef   : > { %v363_v17 = vrot.slane %v362_v16, 2  ;;  %v371_v30 = vadd.f32 %v370_v11, %v369_v28 }
  0xf1   : > { %v364_v18 = vadd.f32 %v363_v17, %v362_v16  ;;  %v372_v35 = vrot.slane %v371_v30, 1 }
  0xf3   : > { %v365_v19 = vrot.slane %v364_v18, 1  ;;  %v373_v38 = vadd.f32 %v372_v35, %v371_v30 }
  0xf5   : > { %v366_v20 = vadd.f32 %v365_v19, %v364_v18 }
  0xf7   : > { %378 = vperm.xlu1 %608, %v366_v20  }
 0x169   : > { %v379_v10 = vpop.permute.xlu1 %378 }
 0x16a   : > { %vm384_vm13 = vcmp.gt.f32.partialorder %v379_v10, %v366_v20  ;;  %vm385_vm14 = vcmp.eq.f32.partialorder %v379_v10, %v366_v20 }
 0x16b   : > { %vm387_vm15 = vmand %vm385_vm14, %vm386_vm12 }
 0x16c   : > { %vm388_vm0 = vmor %vm384_vm13, %vm387_vm15 }
 0x16d   : > { %v544_v23 = vsel %vm388_vm0, 1.0, %v724_v22 }
 0x16e   : > { %v391_v24 = vpack.c.bf16 %v544_v23, %v544_v23 }
 0x170   : > { %v398_v25 = vsel %vm396_vm1, %v391_v24, 0 }
 0x171   : > { %407 = vmatpush.bf16.msra.mxu1 %v398_v25 }
 0x174   : > { %545 = vmatmul.msk.bf16.vlgmr.msra.gmra.mxu1 %vm392_vm2, %v725_v26 }
 0x1f1   : > { %v409_v29 = vpop.f32.mrf.mxu1 }
 0x1f2   : > { %vm551_vm3 = vcmp.lt.s32.totalorder %v409_v29, 0  ;;  %v552_v31 = vceil.f32 %v409_v29  ;;  %v553_v32 = vfloor.f32 %v409_v29 }
 0x1f4   : > { %v554_v33 = vsel %vm551_vm3, %v552_v31, %v553_v32 }
 0x1f5   : > { %v555_v34 = vcvt.f32.s32 %v554_v33 }
 0x1f7   : > { %v414_v36 = vperm.slane %v555_v34, 0 }
 0x1f9   : > { %v411_v37 = vpop.f32.mrf.mxu1  ;;  %vm415_vm4 = vcmp.eq.s32.totalorder %v870_v14, %v414_v36 }
 0x1fa   : > { %547 = vmatpush.msk.msra.mxu2 %vm415_vm4, %v726_v39 }
 0x1fb   : > { %548 = vmatmul.msk.f32.vlgmr.msra.gmra.mxu2 %vm392_vm2, %v373_v38 }
 0x27e   : > { %v438_v40 = vpop.f32.mrf.mxu2 }
 0x27f   : > { %v439_v41 = vadd.f32 1.0, %v438_v40 }
 0x281   : > { %v442_v42 = vsel %vm441_vm5, %v439_v41, -inf }
 0x282   : > { %443 = vmax.xlane.f32.xlu1 %v442_v42 }
 0x2f5   : > { %v444_v43 = vpop.xlane.xlu1 %443 }
 0x2f6   : > { %v445_v44 = vsub.f32 %v439_v41, %v444_v43 }
 0x2f8   : > { %v446_v45 = vmul.f32 1.442695, %v445_v44 }
 0x2fa   : > { %620 = vpow2.f32 %v446_v45 }
 0x300   : > { %v621_v46 = vpop.eup %620 }
 0x301   : > { %v448_v14 = vsel %vm441_vm5, %v621_v46, 0.0 }
 0x302   : > { %449 = vadd.xlane.f32.xlu2 %v448_v14 }
 0x375   : > { %v450_v47 = vpop.xlane.xlu2 %449 }
 0x376   : > { %622 = vrcp.f32 %v450_v47 }
 0x37c   : > { %v623_v48 = vpop.eup %622 }
 0x37d   : > { %v452_v49 = vmul.f32 %v623_v48, %v621_v46 }
 0x37f   : > { %v453_v50 = vadd.f32 1.0, %v452_v49 }
 0x381   : > { %454 = vst.msk [vmem:[%s241_s29] sm:$0x1] %vm441_vm5, %v453_v50 }
 0x382   : > { %681 = shalt.err (!%p678_p4)
}
 0x383   : > { %558 = dma.vmem_to_hbm [thread:$0]  (%p810_p11), %s467_s9, 16, %s469_s10, %s456_s11  }
 0x384 PF: > { %s480_s8 = sand.u32 1, %s708_s20   ;;  %p933_p7 = scmp.ge.s32.totalorder %s720_s23, 2 }
 0x385   : > { %s481_s18 = scalar_lea.sflag [#allocation5], %s480_s8 }
 0x386   : > { %p565_p5 = pnand %p933_p7, %p814_p12 }
 0x388   : > { %p566_p8 = pneg %p565_p5 }
 0x38a   : > { %703 = dma.done.wait (%p566_p8), %s481_s18, 16  }
 0x38b   : > { %705 = vsyncadd (%p566_p8), %s481_s18, 4294967280  ;;  %p19_p10 = scmp.ge.s32.totalorder %s785_s25, 4   ;;  %s934_s20 = smov %s712_s21 }
 0x38c   : > { %s935_s21 = smov %s716_s22  ;;  %s936_s22 = smov %s797_s28 }
 0x38d   : > { %s937_s23 = smov %s785_s25  ;;  %21 = sbr.rel (!%p19_p10) target bundleno = 7 (0x7), region = 85 }
 0x392   :  { %486 = vsyncpa [#allocation4], 1 }
 0x393   :  { %488 = vsyncpa [#allocation4 + $0x1], 1 }
 0x394   :  { %489 = vsyncpa [#allocation5], 1 }
 0x395   :  { %491 = vsyncpa [#allocation5 + $0x1], 1 }

</bundles_post_ra>
